<compile_context>
chip_gen: v6e
topology: v6e:2x2x1
jax: 0.10.0
libtpu: 0.0.40
codegen_flags: <defaults>
</compile_context>

<pallas_src>
import jax
import jax.numpy as jnp
import numpy as np
from jax import lax
from jax.experimental import pallas as pl
from jax.experimental.pallas import tpu as pltpu

KSIZE = 4
STRIDE = 2
PADDING = 1
LEAKY_SLOPE = 0.2

# kh index per (row-parity p, neighbour index jh = dh+1); -1 = no contribution.
# Output row 2a+p receives x[a+dh] * W[..., kh, ...] for k=4, s=2, pad=1.
_KH_OF = np.array([[3, 1, -1],     # p = 0: dh=-1 -> kh=3, dh=0 -> kh=1
                   [-1, 2, 0]])    # p = 1: dh=0 -> kh=2,  dh=+1 -> kh=0


def _leaky(x):
    return jnp.where(x >= 0, x, LEAKY_SLOPE * x)


def _vmem_capacity_bytes():
    try:
        return int(pltpu.get_tpu_info().vmem_capacity_bytes)
    except Exception:
        return 64 * 1024 * 1024     # conservative (v7x-sized) fallback


def _pick_rows(H, W, C3, PC, out_isize, n_batch, budget):
    """Largest divisor-of-H row tile whose working set fits `budget`, with
    >= 2 grid steps when the batch alone cannot feed both v7x TensorCores."""
    per_row = (2 * ((W + 2) * C3 * 2        # cols tile, double-buffered, bf16
                    + W * PC * 2            # mask tile, bf16
                    + W * PC * out_isize)   # output tile
               + W * PC * 4                 # f32 accumulator
               + 3 * W * C3 * 2)            # in-kernel shifted slices (approx)
    fixed = 2 * 3 * C3 * PC * 2 + (2 << 20)  # resident weight + slack
    max_thr = max(1, (budget - fixed) // per_row)
    divs = [d for d in range(1, H + 1) if H % d == 0]
    cap = H // 2 if (n_batch < 2 and H >= 2) else H   # dual-TC: >= 2 tiles
    feas = [d for d in divs if d <= min(max_thr, cap)]
    return max(feas) if feas else 1


def _conv_mask_kernel(cols_ref, w_ref, mconv_ref, out_ref):
    """conv-transpose (phase-packed) * mask -> leaky, for one (THR, W) tile."""
    thr, wp2, c3 = cols_ref.shape
    w_cols = wp2 - 2
    pc = out_ref.shape[-1]

    cols = cols_ref[...]                                   # (THR, W+2, 3*Cin)
    acc = None
    for jw in range(3):                                    # column neighbours
        piece = cols[:, jw:jw + w_cols, :].reshape(thr * w_cols, c3)
        part = jnp.dot(piece, w_ref[jw],
                       preferred_element_type=jnp.float32)  # (THR*W, PC)
        acc = part if acc is None else acc + part

    y = acc.reshape(thr, w_cols, pc) * mconv_ref[...].astype(jnp.float32)
    out_ref[...] = _leaky(y).astype(out_ref.dtype)


@jax.jit
def reverse_attention_forward(ec_skip, dc, mask, w_t):
    """ec_skip/dc/mask: NCHW; w_t: ConvTranspose2d weight (Cin, Cout, K, K)."""
    N, Cin, H, W = dc.shape
    Cout = w_t.shape[1]
    Cskip = ec_skip.shape[1]
    Hout = (H - 1) * STRIDE - 2 * PADDING + KSIZE          # == 2H
    Wout = (W - 1) * STRIDE - 2 * PADDING + KSIZE          # == 2W
    out_dtype = ec_skip.dtype
    out_isize = jnp.dtype(out_dtype).itemsize

    Coutp = -(-Cout // 32) * 32          # 4*Coutp multiple of 128 (lane-dense)
    PC = 4 * Coutp
    C3 = 3 * Cin

    # ---- skip half: pure elementwise -> plain XLA, fuses into the concat ----
    y_skip = ec_skip * mask[:, :Cskip].astype(ec_skip.dtype)
    skip_out = _leaky(y_skip).astype(out_dtype)

    # ---- weight: (Cin, Cout, 4, 4) -> (3 [dw], 3*Cin [dh,ci], 4*Coutp) ------
    ph_p = np.array([0, 0, 1, 1])
    ph_q = np.array([0, 1, 0, 1])
    kh_idx = _KH_OF[ph_p]                                   # (4, 3) over jh
    kw_idx = _KH_OF[ph_q]                                   # (4, 3) over jw
    valid = (kh_idx[:, :, None] >= 0) & (kw_idx[:, None, :] >= 0)   # (4,3,3)
    khc = np.clip(kh_idx, 0, KSIZE - 1)
    kwc = np.clip(kw_idx, 0, KSIZE - 1)
    w_sel = w_t[:, :, khc[:, :, None], kwc[:, None, :]]     # (Cin,Cout,4,3,3)
    w_sel = jnp.where(valid[None, None], w_sel, 0.0)
    w_sel = jnp.transpose(w_sel, (4, 3, 0, 2, 1))           # (jw,jh,Cin,ph,Cout)
    if Coutp != Cout:
        w_sel = jnp.pad(w_sel, ((0, 0),) * 4 + ((0, Coutp - Cout),))
    w3 = w_sel.reshape(3, C3, PC).astype(jnp.bfloat16)

    # ---- decoder features: 3 row-shifted neighbourhoods, bf16 ---------------
    x = jnp.transpose(dc, (0, 2, 3, 1)).astype(jnp.bfloat16)        # NHWC
    x_pad = jnp.pad(x, ((0, 0), (1, 1), (1, 1), (0, 0)))
    cols3 = jnp.concatenate([x_pad[:, dh:dh + H] for dh in range(3)],
                            axis=-1)                        # (N, H, W+2, 3*Cin)

    # ---- conv-half mask, phase-major, bf16 -----------------------------------
    m = mask[:, Cskip:Cskip + Cout].astype(jnp.bfloat16)
    m = jnp.transpose(m, (0, 2, 3, 1)).reshape(N, H, 2, W, 2, Cout)
    m = jnp.transpose(m, (0, 1, 3, 2, 4, 5))                # (N, H, W, p, q, C)
    if Coutp != Cout:
        m = jnp.pad(m, ((0, 0),) * 5 + ((0, Coutp - Cout),))
    mconv = m.reshape(N, H, W, PC)

    # ---- tiling: generation-aware VMEM budget, divisor-of-H row tiles -------
    vmem_cap = _vmem_capacity_bytes()
    budget = max(8 << 20, vmem_cap // 2 - (8 << 20))        # 64MiB->24, 128->56
    vmem_limit = int(max(32 << 20, min(vmem_cap - (16 << 20), 96 << 20)))
    THR = _pick_rows(H, W, C3, PC, out_isize, N, budget)
    grid = (N, H // THR)

    row_spec = lambda last: pl.BlockSpec((pl.Squeezed(), THR, W, last),
                                         lambda n, t: (n, t, 0, 0))
    flops = 2 * N * H * W * 3 * C3 * PC
    bytes_accessed = int(cols3.size * 2 + w3.size * 2 + mconv.size * 2
                         + N * H * W * PC * out_isize)

    out_pm = pl.pallas_call(
        _conv_mask_kernel,
        out_shape=jax.ShapeDtypeStruct((N, H, W, PC), out_dtype),
        grid=grid,
        in_specs=[
            pl.BlockSpec((pl.Squeezed(), THR, W + 2, C3),
                         lambda n, t: (n, t, 0, 0)),
            pl.BlockSpec((3, C3, PC), lambda n, t: (0, 0, 0)),
            row_spec(PC),
        ],
        out_specs=row_spec(PC),
        compiler_params=pltpu.CompilerParams(
            dimension_semantics=("parallel", "parallel"),
            vmem_limit_bytes=vmem_limit),
        cost_estimate=pl.CostEstimate(flops=flops, transcendentals=0,
                                      bytes_accessed=bytes_accessed),
    )(cols3, w3, mconv)

    # ---- phase-major -> NCHW output grid -------------------------------------
    t = out_pm.reshape(N, H, W, 2, 2, Coutp)[..., :Cout]    # (N,a,b,p,q,c)
    t = jnp.transpose(t, (0, 5, 1, 3, 2, 4))                # (N,c,a,p,b,q)
    conv_out = t.reshape(N, Cout, Hout, Wout)

    return jnp.concatenate([skip_out, conv_out], axis=1)


def _reference(ec_skip, dc, mask, w_t):
    """Pure-JAX f32 reference of the PyTorch forward (NCHW)."""
    w_conv = jnp.transpose(w_t[:, :, ::-1, ::-1], (2, 3, 0, 1))   # HWIO
    pad = KSIZE - 1 - PADDING
    conv = lax.conv_general_dilated(
        jnp.transpose(dc, (0, 2, 3, 1)), w_conv,
        window_strides=(1, 1), padding=[(pad, pad), (pad, pad)],
        lhs_dilation=(STRIDE, STRIDE),
        dimension_numbers=('NHWC', 'HWIO', 'NHWC'),
        precision=lax.Precision.HIGHEST)
    conv = jnp.transpose(conv, (0, 3, 1, 2))
    concat = jnp.concatenate([ec_skip, conv], axis=1)
    y = concat * mask
    return jnp.where(y >= 0, y, LEAKY_SLOPE * y)


if __name__ == "__main__":
    # Small, deterministic shapes consistent with the module.
    N, Cin, Cout, Cskip, H, W = 2, 8, 8, 8, 8, 8
    Hout, Wout = 2 * H, 2 * W
    Ctot = Cskip + Cout

    key = jax.random.PRNGKey(0)
    k_w, k_ec, k_dc, k_mask = jax.random.split(key, 4)

    # Deterministic "weights_init"-style ConvTranspose2d weight (Cin,Cout,K,K).
    w_t = 0.02 * jax.random.normal(k_w, (Cin, Cout, KSIZE, KSIZE), jnp.float32)

    ec_skip = jax.random.normal(k_ec, (N, Cskip, Hout, Wout), jnp.float32)
    dc_feats = jax.random.normal(k_dc, (N, Cin, H, W), jnp.float32)
    mask_feats = jax.random.uniform(k_mask, (N, Ctot, Hout, Wout), jnp.float32)

    out = reverse_attention_forward(ec_skip, dc_feats, mask_feats, w_t)
    out = jax.block_until_ready(out)

    ref = jax.block_until_ready(_reference(ec_skip, dc_feats, mask_feats, w_t))
    # bf16 MXU operands / bf16 mask stream -> looser tolerance vs f32 reference.
    np.testing.assert_allclose(np.asarray(out), np.asarray(ref),
                               rtol=3e-2, atol=3e-2)

    print("KERNEL_OK")
</pallas_src>

<mosaic_0001>
module attributes {stable_mosaic.version = 11 : i64} {
  func.func @_conv_mask_kernel(%arg0: i32, %arg1: i32, %arg2: memref<1x8x10x24xbf16, #tpu.memory_space<vmem>>, %arg3: memref<3x24x128xbf16, #tpu.memory_space<vmem>>, %arg4: memref<1x8x8x128xbf16, #tpu.memory_space<vmem>>, %arg5: memref<1x8x8x128xf32, #tpu.memory_space<vmem>>) attributes {dimension_semantics = [#tpu.dimension_semantics<parallel>, #tpu.dimension_semantics<parallel>], iteration_bounds = array<i64: 2, 1>, scalar_prefetch = 0 : i64, scratch_operands = 0 : i64, tpu.core_type = #tpu.core_type<tc>, window_params = [{transform_indices = @transform_0, window_bounds = array<i64: 1, 8, 10, 24>}, {pipeline_mode = #tpu.pipeline_mode<synchronous>, transform_indices = @transform_1, window_bounds = array<i64: 3, 24, 128>}, {transform_indices = @transform_2, window_bounds = array<i64: 1, 8, 8, 128>}, {transform_indices = @transform_3, window_bounds = array<i64: 1, 8, 8, 128>}]} {
    %c0 = arith.constant 0 : index
    %c0_0 = arith.constant 0 : index
    %c0_1 = arith.constant 0 : index
    %c0_2 = arith.constant 0 : index
    %0 = vector.load %arg2[%c0, %c0_0, %c0_1, %c0_2] : memref<1x8x10x24xbf16, #tpu.memory_space<vmem>>, vector<1x8x10x24xbf16>
    %1 = vector.shape_cast %0 : vector<1x8x10x24xbf16> to vector<8x10x24xbf16>
    %2 = vector.extract_strided_slice %1 {offsets = [0, 0, 0], sizes = [8, 8, 24], strides = [1, 1, 1]} : vector<8x10x24xbf16> to vector<8x8x24xbf16>
    %3 = vector.shape_cast %2 : vector<8x8x24xbf16> to vector<64x24xbf16>
    %c0_3 = arith.constant 0 : index
    %c0_4 = arith.constant 0 : index
    %c0_5 = arith.constant 0 : index
    %4 = vector.load %arg3[%c0_3, %c0_4, %c0_5] : memref<3x24x128xbf16, #tpu.memory_space<vmem>>, vector<1x24x128xbf16>
    %5 = vector.shape_cast %4 : vector<1x24x128xbf16> to vector<24x128xbf16>
    %cst = arith.constant dense<0.000000e+00> : vector<64x128xf32>
    %6 = tpu.matmul %3, %5, %cst {dimension_numbers = #tpu.dot_dimension_numbers<[1], [0], [0], [1], [0, 0, 1, 1], [], []>} : vector<64x24xbf16>, vector<24x128xbf16>, vector<64x128xf32> -> vector<64x128xf32>
    %7 = vector.extract_strided_slice %1 {offsets = [0, 1, 0], sizes = [8, 8, 24], strides = [1, 1, 1]} : vector<8x10x24xbf16> to vector<8x8x24xbf16>
    %8 = vector.shape_cast %7 : vector<8x8x24xbf16> to vector<64x24xbf16>
    %c1 = arith.constant 1 : index
    %c0_6 = arith.constant 0 : index
    %c0_7 = arith.constant 0 : index
    %9 = vector.load %arg3[%c1, %c0_6, %c0_7] : memref<3x24x128xbf16, #tpu.memory_space<vmem>>, vector<1x24x128xbf16>
    %10 = vector.shape_cast %9 : vector<1x24x128xbf16> to vector<24x128xbf16>
    %cst_8 = arith.constant dense<0.000000e+00> : vector<64x128xf32>
    %11 = tpu.matmul %8, %10, %cst_8 {dimension_numbers = #tpu.dot_dimension_numbers<[1], [0], [0], [1], [0, 0, 1, 1], [], []>} : vector<64x24xbf16>, vector<24x128xbf16>, vector<64x128xf32> -> vector<64x128xf32>
    %12 = arith.addf %6, %11 : vector<64x128xf32>
    %13 = vector.extract_strided_slice %1 {offsets = [0, 2, 0], sizes = [8, 8, 24], strides = [1, 1, 1]} : vector<8x10x24xbf16> to vector<8x8x24xbf16>
    %14 = vector.shape_cast %13 : vector<8x8x24xbf16> to vector<64x24xbf16>
    %c2 = arith.constant 2 : index
    %c0_9 = arith.constant 0 : index
    %c0_10 = arith.constant 0 : index
    %15 = vector.load %arg3[%c2, %c0_9, %c0_10] : memref<3x24x128xbf16, #tpu.memory_space<vmem>>, vector<1x24x128xbf16>
    %16 = vector.shape_cast %15 : vector<1x24x128xbf16> to vector<24x128xbf16>
    %cst_11 = arith.constant dense<0.000000e+00> : vector<64x128xf32>
    %17 = tpu.matmul %14, %16, %cst_11 {dimension_numbers = #tpu.dot_dimension_numbers<[1], [0], [0], [1], [0, 0, 1, 1], [], []>} : vector<64x24xbf16>, vector<24x128xbf16>, vector<64x128xf32> -> vector<64x128xf32>
    %18 = arith.addf %12, %17 : vector<64x128xf32>
    %19 = vector.shape_cast %18 : vector<64x128xf32> to vector<8x8x128xf32>
    %c0_12 = arith.constant 0 : index
    %c0_13 = arith.constant 0 : index
    %c0_14 = arith.constant 0 : index
    %c0_15 = arith.constant 0 : index
    %20 = vector.load %arg4[%c0_12, %c0_13, %c0_14, %c0_15] : memref<1x8x8x128xbf16, #tpu.memory_space<vmem>>, vector<1x8x8x128xbf16>
    %21 = vector.shape_cast %20 : vector<1x8x8x128xbf16> to vector<8x8x128xbf16>
    %22 = arith.extf %21 : vector<8x8x128xbf16> to vector<8x8x128xf32>
    %23 = arith.mulf %19, %22 : vector<8x8x128xf32>
    %cst_16 = arith.constant 0.000000e+00 : f32
    %24 = vector.broadcast %cst_16 : f32 to vector<8x8x128xf32>
    %25 = arith.cmpf oge, %23, %24 : vector<8x8x128xf32>
    %cst_17 = arith.constant 2.000000e-01 : f32
    %26 = vector.broadcast %cst_17 : f32 to vector<8x8x128xf32>
    %27 = arith.mulf %26, %23 : vector<8x8x128xf32>
    %28 = arith.select %25, %23, %27 : vector<8x8x128xi1>, vector<8x8x128xf32>
    %c0_18 = arith.constant 0 : index
    %c0_19 = arith.constant 0 : index
    %c0_20 = arith.constant 0 : index
    %c0_21 = arith.constant 0 : index
    %29 = vector.load %arg5[%c0_18, %c0_19, %c0_20, %c0_21] : memref<1x8x8x128xf32, #tpu.memory_space<vmem>>, vector<1x8x8x128xf32>
    %30 = vector.shape_cast %29 : vector<1x8x8x128xf32> to vector<8x8x128xf32>
    %31 = vector.shape_cast %28 : vector<8x8x128xf32> to vector<1x8x8x128xf32>
    tpu.vector_store %arg5[%c0_18, %c0_19, %c0_20, %c0_21], %31 {strides = array<i32>} : memref<1x8x8x128xf32, #tpu.memory_space<vmem>>, vector<1x8x8x128xf32>,
    return
  }
  func.func @transform_0(%arg0: i32, %arg1: i32) -> (i32, i32, i32, i32) {
    %c0_i32 = arith.constant 0 : i32
    %c0_i32_0 = arith.constant 0 : i32
    %c0_i32_1 = arith.constant 0 : i32
    return %arg0, %arg1, %c0_i32, %c0_i32_0 : i32, i32, i32, i32
  }
  func.func @transform_1(%arg0: i32, %arg1: i32) -> (i32, i32, i32) {
    %c0_i32 = arith.constant 0 : i32
    %c0_i32_0 = arith.constant 0 : i32
    %c0_i32_1 = arith.constant 0 : i32
    %c0_i32_2 = arith.constant 0 : i32
    return %c0_i32, %c0_i32_0, %c0_i32_1 : i32, i32, i32
  }
  func.func @transform_2(%arg0: i32, %arg1: i32) -> (i32, i32, i32, i32) {
    %c0_i32 = arith.constant 0 : i32
    %c0_i32_0 = arith.constant 0 : i32
    %c0_i32_1 = arith.constant 0 : i32
    return %arg0, %arg1, %c0_i32, %c0_i32_0 : i32, i32, i32, i32
  }
  func.func @transform_3(%arg0: i32, %arg1: i32) -> (i32, i32, i32, i32) {
    %c0_i32 = arith.constant 0 : i32
    %c0_i32_0 = arith.constant 0 : i32
    %c0_i32_1 = arith.constant 0 : i32
    return %arg0, %arg1, %c0_i32, %c0_i32_0 : i32, i32, i32, i32
  }
}

</mosaic_0001>

<bundles_post_ra>
// kernel: reverse_attention_forward.1
= control target key start
LH: loop header
LB: loop body
LE: loop exit
PB: predicated region body
PF: predicated region fallthrough
CT: control target
= control target key end

     0   :  { %s1139_s12 = smov 0   ;;  %s1141_s13 = smov 0   ;;  %s1383_s0 = inlined_call_operand.vmem [shape: bf16[2,8,10,24], index: 0, kind: input, shape index: {}]   ;;  %s1384_s1 = inlined_call_operand.vmem [shape: bf16[3,24,128], index: 1, kind: input, shape index: {}]   ;;  %s1385_s2 = inlined_call_operand.vmem [shape: bf16[2,8,8,128], index: 2, kind: input, shape index: {}]   ;;  %s1386_s3 = inlined_call_operand.vmem [shape: f32[2,8,8,128], index: 3, kind: output, shape index: {}]  }
   0x1   :  { %s1143_s14 = smov 0  }
   0x2 LB: > { %s25_s15 = sadd.s32 1, %s1113_s13  ;;  %p924_p0 = scmp.ge.s32.totalorder %s1117_s14, 1  ;;  %s1117_s14 = sphi %s1143_s14, %s13_s14   ;;  %s1113_s13 = sphi %s1141_s13, %s1392_s13   ;;  %s1109_s12 = sphi %s1139_s12, %s1391_s12  }
   0x3   : > { %p27_p1 = scmp.ge.s32.totalorder %s25_s15, 2  ;;  %p176_p2 = scmp.lt.s32.totalorder %s1117_s14, 3 }
   0x5   : > { %s1394_s15 = smov (%p27_p1, %s25_s15), 0  ;;  %p177_p3 = pnand %p924_p0, %p176_p2 }
   0x6   : > { %p219_p4 = scmp.lt.s32.totalorder (!%p177_p3), %s1109_s12, 1 }
   0x7   : > { %180 = sbr.rel (%p177_p3) target bundleno = 268 (0x10c), region = 32 }
   0xc   : > { %v1085_v0 = vld [vmem:[%s1384_s1 + $0x14] ss:$0 sps:$4 sm:$0xff]   ;;  %vm422_vm0 = vcmask 1043456   ;;  %v1086_v1 = vld [vmem:[%s1384_s1 + $0xc] sm:$0xff]   ;;  %s1396_s12 = smov (!%p219_p4, %s1109_s12), 1  ;;  %vm409_vm3 = vcmask 195584  }
   0xd   : > { %1058 = vmatprep.subr.msk.bf16.mxu1 %vm422_vm0, %v1085_v0  ;;  %1057 = vmatprep.subr.msk.bf16.mxu0 %vm422_vm0, %v1085_v0  ;;  %v424_v2 = vsel %vm422_vm0, %v1085_v0, 0  ;;  %v1171_v3 = vld [vmem:[%s1384_s1 + $0x8] ss:$0 sps:$4 sm:$0xff]   ;;  %v1088_v4 = vld [vmem:[%s1384_s1 + $0x20] ss:$0 sps:$4 sm:$0xff]   ;;  %s977_s24 = sshll.u32 %s1396_s12, 6 }
   0xe   : > { %1055 = vmatpush3.bf16.msra.mxu1 %v424_v2  ;;  %1018 = vmatpush3.bf16.msra.mxu0 %v424_v2  ;;  %s1182_s27 = scalar_lea.vmem %s1383_s0, %s977_s24  ;;  %vm269_vm1 = vsmask.f32 3328  ;;  %vm270_vm2 = vsmask.f32 7440  ;;  %v1209_v16 = vsel %vm422_vm0, %v1088_v4, 0  ;;  %vm608_vm5 = vcmask 1042432   ;;  %s1364_s11 = scalar_lea.vmem %s1386_s3, %s977_s24 }
   0xf   : > { %1054 = vmatprep.subr.bf16.mxu1 %v1086_v1  ;;  %1019 = vmatprep.subr.bf16.mxu0 %v1086_v1  ;;  %v1185_v5 = vld [vmem:[%s1182_s27] sm:$0xf]  ;;  %v1188_v6 = vld [vmem:[%s1182_s27 + $0x4] sm:$0x1]  ;;  %v1191_v7 = vld [vmem:[%s1182_s27 + $0x8] sm:$0xf] }
  0x10   : > { %v1194_v8 = vld [vmem:[%s1182_s27 + $0xc] sm:$0x1]  ;;  %v273_v9 = vshrl.u32 %v1185_v5, 16  ;;  %v276_v10 = vshll.u32 %v1185_v5, 16  ;;  %v282_v11 = vshll.u32 %v1188_v6, 16  ;;  %v287_v12 = vshrl.u32 %v1191_v7, 16  ;;  %vm1225_vm4 = vmor %vm269_vm1, %vm270_vm2 }
  0x11   : > { %v290_v13 = vshll.u32 %v1191_v7, 16  ;;  %v296_v14 = vshll.u32 %v1194_v8, 16  ;;  %v1206_v15 = vld [vmem:[%s1182_s27 + $0x20] sm:$0xf]  ;;  %v1212_v21 = vld [vmem:[%s1182_s27 + $0x24] sm:$0x1] }
  0x12   : > { %1056 = vmatpush3.bf16.msra.mxu1 %v1086_v1  ;;  %1020 = vmatpush3.bf16.msra.mxu0 %v1086_v1  ;;  %v275_v17 = vrot.slane %v273_v9, 4  ;;  %v278_v18 = vrot.slane %v276_v10, 5  ;;  %v284_v19 = vrot.slane %v282_v11, 5  ;;  %v289_v20 = vrot.slane %v287_v12, 4  ;;  %v1215_v24 = vld [vmem:[%s1182_s27 + $0x28] sm:$0xf] }
  0x13   : > { %1059 = vmatprep.subr.msk.bf16.mxu1 %vm422_vm0, %v1171_v3  ;;  %1060 = vmatprep.subr.msk.bf16.mxu0 %vm422_vm0, %v1088_v4  ;;  %v292_v22 = vrot.slane %v290_v13, 5  ;;  %v298_v23 = vrot.slane %v296_v14, 5  ;;  %v1218_v25 = vld [vmem:[%s1182_s27 + $0x2c] sm:$0x1]  ;;  %v329_v27 = vshrl.u32 %v1206_v15, 16  ;;  %v332_v28 = vshll.u32 %v1206_v15, 16 }
  0x14   : > { %v279_v26 = vor.u32 %v278_v18, %v275_v17  ;;  %v338_v29 = vshll.u32 %v1212_v21, 16  ;;  %v343_v32 = vshrl.u32 %v1215_v24, 16  ;;  %v346_v33 = vshll.u32 %v1215_v24, 16  ;;  %v1233_v35 = vld [vmem:[%s1182_s27 + $0x10] sm:$0xf]  ;;  %s978_s5 = sshll.u32 %s1396_s12, 5 }
  0x15   : > { %v293_v31 = vor.u32 %v292_v22, %v289_v20  ;;  %v352_v34 = vshll.u32 %v1218_v25, 16  ;;  %v613_v37 = vrot.slane %v1188_v6, 5  ;;  %v331_v38 = vrot.slane %v329_v27, 4  ;;  %v1237_v40 = vld [vmem:[%s1182_s27 + $0x14] sm:$0x1]  ;;  %s237_s8 = scalar_lea.vmem %s1385_s2, %s978_s5 }
  0x16   : > { %v280_v36 = vrot.slane %v279_v26, 4  ;;  %v334_v39 = vrot.slane %v332_v28, 5  ;;  %vm609_vm6 = vcmask 1046532   ;;  %v617_v42 = vrot.slane %v1194_v8, 5  ;;  %v1241_v45 = vld [vmem:[%s1182_s27 + $0x18] sm:$0xf] }
  0x17   : > { %v294_v41 = vrot.slane %v293_v31, 4  ;;  %v345_v43 = vrot.slane %v343_v32, 4  ;;  %v348_v44 = vrot.slane %v346_v33, 5  ;;  %v340_v48 = vrot.slane %v338_v29, 5  ;;  %v1248_v52 = vld [vmem:[%s1182_s27 + $0x1c] sm:$0x1]  ;;  %vm1287_vm7 = vmor %vm608_vm5, %vm609_vm6 }
  0x18   : > { %v285_v46 = vsel %vm1225_vm4, %v280_v36, %v284_v19  ;;  %v335_v47 = vor.u32 %v334_v39, %v331_v38  ;;  %v354_v49 = vrot.slane %v352_v34, 5  ;;  %v301_v53 = vshrl.u32 %v1233_v35, 16  ;;  %v1256_v63 = vld [vmem:[%s1182_s27 + $0x30] sm:$0xf]  ;;  %v1264_v9 = vld [vmem:[%s1182_s27 + $0x34] sm:$0x1] }
  0x19   : > { %v299_v50 = vsel %vm1225_vm4, %v294_v41, %v298_v23  ;;  %v349_v51 = vor.u32 %v348_v44, %v345_v43  ;;  %v304_v54 = vshll.u32 %v1233_v35, 16  ;;  %v310_v57 = vshll.u32 %v1237_v40, 16  ;;  %v1269_v14 = vld [vmem:[%s1182_s27 + $0x38] sm:$0xf]  ;;  %v1272_v17 = vld [vmem:[%s1182_s27 + $0x3c] sm:$0x1] }
  0x1a   : > { %v934_v55 = vcombine.low %v285_v46, %v299_v50  ;;  %v336_v56 = vrot.slane %v335_v47, 4  ;;  %v315_v58 = vshrl.u32 %v1241_v45, 16  ;;  %v303_v60 = vrot.slane %v301_v53, 4 }
  0x1b   : > { %v350_v59 = vrot.slane %v349_v51, 4  ;;  %v306_v61 = vrot.slane %v304_v54, 5  ;;  %v318_v62 = vshll.u32 %v1241_v45, 16  ;;  %v629_v1 = vrot.slane %v1212_v21, 5 }
  0x1c   : > { %1021 = vmatprep.mubr.msk.bf16.mxu0 %vm409_vm3, %v934_v55  ;;  %v341_v0 = vsel %vm1225_vm4, %v336_v56, %v340_v48  ;;  %v317_v2 = vrot.slane %v315_v58, 4  ;;  %v324_v4 = vshll.u32 %v1248_v52, 16  ;;  %v312_v12 = vrot.slane %v310_v57, 5 }
  0x1d   : > { %v355_v10 = vsel %vm1225_vm4, %v350_v59, %v354_v49  ;;  %v307_v11 = vor.u32 %v306_v61, %v303_v60  ;;  %v320_v13 = vrot.slane %v318_v62, 5  ;;  %v621_v20 = vrot.slane %v1237_v40, 5 }
  0x1e   : > { %v936_v18 = vcombine.low %v341_v0, %v355_v10  ;;  %v326_v19 = vrot.slane %v324_v4, 5  ;;  %v357_v21 = vshrl.u32 %v1256_v63, 16  ;;  %v360_v26 = vshll.u32 %v1256_v63, 16  ;;  %v1089_v4 = vld [vmem:[%s1384_s1] sm:$0xff]  }
  0x1f   : > { %v308_v22 = vrot.slane %v307_v11, 4  ;;  %v321_v23 = vor.u32 %v320_v13, %v317_v2  ;;  %v366_v27 = vshll.u32 %v1264_v9, 16  ;;  %v371_v29 = vshrl.u32 %v1269_v14, 16 }
  0x20   : > { %1025 = vmatprep.mubr.msk.bf16.mxu1 %vm409_vm3, %v936_v18  ;;  %v359_v28 = vrot.slane %v357_v21, 4  ;;  %v374_v31 = vshll.u32 %v1269_v14, 16  ;;  %v380_v32 = vshll.u32 %v1272_v17, 16  ;;  %v625_v36 = vrot.slane %v1248_v52, 5  ;;  %v1090_v52 = vld [vmem:[%s1384_s1 + $0x18] sm:$0xff]  }
  0x21   : > { %v313_v33 = vsel %vm1225_vm4, %v308_v22, %v312_v12  ;;  %v322_v34 = vrot.slane %v321_v23, 4  ;;  %v362_v38 = vrot.slane %v360_v26, 5  ;;  %v368_v40 = vrot.slane %v366_v27, 5 }
  0x22   : > { %v373_v41 = vrot.slane %v371_v29, 4  ;;  %v376_v43 = vrot.slane %v374_v31, 5  ;;  %v954_v44 = vrot.slane %v1185_v5, 9  ;;  %v382_v48 = vrot.slane %v380_v32, 5 }
  0x23   : > { %v327_v46 = vsel %vm1225_vm4, %v322_v34, %v326_v19  ;;  %v363_v47 = vor.u32 %v362_v38, %v359_v28  ;;  %v955_v49 = vrot.slane %v1191_v7, 9  ;;  %v956_v54 = vrot.slane %v1233_v35, 9  ;;  %v996_v28 = vld [vmem:[%s237_s8 + $0x8] sm:$0xff]  }
  0x24   : > { %v935_v50 = vcombine.low %v313_v33, %v327_v46  ;;  %v377_v51 = vor.u32 %v376_v43, %v373_v41  ;;  %v614_v53 = vsel %vm1287_vm7, %v954_v44, %v613_v37  ;;  %v633_v55 = vrot.slane %v1218_v25, 5 }
  0x25   : > { %v364_v56 = vrot.slane %v363_v47, 4  ;;  %v618_v57 = vsel %vm1287_vm7, %v955_v49, %v617_v42  ;;  %v957_v58 = vrot.slane %v1241_v45, 9  ;;  %v958_v6 = vrot.slane %v1206_v15, 9 }
  0x26   : > { %1022 = vmatmul.mubr.msk.bf16.vlgmr.msra.gmra.mxu0 %vm409_vm3, %v935_v50  ;;  %v378_v59 = vrot.slane %v377_v51, 4  ;;  %v965_v60 = vcombine.low %v614_v53, %v618_v57  ;;  %v622_v25 = vsel %vm1287_vm7, %v956_v54, %v621_v20  ;;  %v959_v42 = vrot.slane %v1215_v24, 9  ;;  %v997_v53 = vld [vmem:[%s237_s8 + $0x10] sm:$0xff]  }
  0x27   : > { %v369_v37 = vsel %vm1225_vm4, %v364_v56, %v368_v40  ;;  %1042 = vmatpush3.bf16.msra.mxu0 %v1209_v16  ;;  %v626_v8 = vsel %vm1287_vm7, %v957_v58, %v625_v36  ;;  %v944_v62 = vcombine.low %v1185_v5, %v1191_v7  ;;  %v630_v16 = vsel %vm1287_vm7, %v958_v6, %v629_v1 }
  0x28   : > { %v383_v61 = vsel %vm1225_vm4, %v378_v59, %v382_v48  ;;  %1043 = vmatprep.subr.bf16.mxu0 %v1090_v52  ;;  %1045 = vmatprep.mubr.msk.bf16.mxu0 %vm409_vm3, %v965_v60  ;;  %v533_v2 = vsel %vm422_vm0, %v1171_v3, 0  ;;  %v634_v30 = vsel %vm1287_vm7, %v959_v42, %v633_v55  ;;  %v966_v10 = vcombine.low %v622_v25, %v626_v8 }
  0x29   : > { %v937_v0 = vcombine.low %v369_v37, %v383_v61  ;;  %v960_v11 = vrot.slane %v1256_v63, 9  ;;  %v967_v5 = vcombine.low %v630_v16, %v634_v30  ;;  %v637_v7 = vrot.slane %v1264_v9, 5 }
  0x2a   : > { %v961_v1 = vrot.slane %v1269_v14, 9  ;;  %v641_v3 = vrot.slane %v1272_v17, 5  ;;  %v945_v12 = vcombine.low %v1233_v35, %v1241_v45  ;;  %v946_v17 = vcombine.low %v1206_v15, %v1215_v24 }
  0x2b   : > { %1026 = vmatmul.mubr.msk.bf16.vlgmr.msra.gmra.mxu1 %vm409_vm3, %v937_v0  ;;  %1044 = vmatpush3.bf16.msra.mxu0 %v1090_v52  ;;  %v638_v13 = vsel %vm1287_vm7, %v960_v11, %v637_v7  ;;  %v947_v35 = vcombine.low %v1256_v63, %v1269_v14  ;;  %v981_v14 = vld [vmem:[%s237_s8] sm:$0xff]   ;;  %v986_v32 = vunpack.c.l.bf16 %v996_v28  ;;  %v987_v47 = vunpack.c.h.bf16 %v996_v28  ;;  %v998_v52 = vld [vmem:[%s237_s8 + $0x18] sm:$0xff]  }
  0x2c   : > { %1030 = vmatpush3.bf16.msra.mxu1 %v533_v2  ;;  %1033 = vmatprep.mubr.msk.bf16.mxu1 %vm409_vm3, %v944_v62  ;;  %v642_v9 = vsel %vm1287_vm7, %v961_v1, %v641_v3  ;;  %v982_v39 = vunpack.c.l.bf16 %v981_v14  ;;  %v983_v55 = vunpack.c.h.bf16 %v981_v14  ;;  %v994_v25 = vunpack.c.l.bf16 %v998_v52 }
  0x2d   : > { %1031 = vmatprep.subr.bf16.mxu1 %v1089_v4  ;;  %v968_v18 = vcombine.low %v638_v13, %v642_v9  ;;  %v990_v42 = vunpack.c.l.bf16 %v997_v53  ;;  %v995_v7 = vunpack.c.h.bf16 %v998_v52 }
  0x2e   : > { %1046 = vmatmul.mubr.msk.bf16.vlgmr.msra.gmra.mxu0 %vm409_vm3, %v966_v10 }
  0x2f   : > { %1049 = vmatprep.mubr.msk.bf16.mxu0 %vm409_vm3, %v967_v5 }
  0x30   : > { %1032 = vmatpush3.bf16.msra.mxu1 %v1089_v4 }
  0x33   : > { %1034 = vmatmul.mubr.msk.bf16.vlgmr.msra.gmra.mxu1 %vm409_vm3, %v945_v12 }
  0x34   : > { %1037 = vmatprep.mubr.msk.bf16.mxu1 %vm409_vm3, %v946_v17 }
  0x36   : > { %1050 = vmatmul.mubr.msk.bf16.gmra.mxu0 %vm409_vm3, %v968_v18  ;;  %v991_v18 = vunpack.c.h.bf16 %v997_v53 }
  0x3b   : > { %1038 = vmatmul.mubr.msk.bf16.gmra.mxu1 %vm409_vm3, %v947_v35 }
  0xe6   : > { %v1023_v45 = vpop.f32.mrf.mxu0 }
  0xe8   : > { %v460_v19 = vpop.f32.mrf.mxu0 }
  0xea   : > { %v1024_v20 = vpop.f32.mrf.mxu0 }
  0xeb   : > { %v1027_v21 = vpop.f32.mrf.mxu1 }
  0xec   : > { %v463_v22 = vpop.f32.mrf.mxu0 }
  0xed   : > { %v476_v23 = vpop.f32.mrf.mxu1 }
  0xee   : > { %v1047_v15 = vpop.f32.mrf.mxu0 }
  0xef   : > { %v1028_v24 = vpop.f32.mrf.mxu1 }
  0xf0   : > { %v717_v26 = vpop.f32.mrf.mxu0 }
  0xf1   : > { %v479_v27 = vpop.f32.mrf.mxu1 }
  0xf2   : > { %v1048_v29 = vpop.f32.mrf.mxu0 }
  0xf3   : > { %v1035_v63 = vpop.f32.mrf.mxu1 }
  0xf4   : > { %v578_v31 = vadd.f32 %v1035_v63, %v1023_v45  ;;  %v720_v33 = vpop.f32.mrf.mxu0 }
  0xf5   : > { %v569_v34 = vpop.f32.mrf.mxu1 }
  0xf6   : > { %v750_v36 = vadd.f32 %v1047_v15, %v578_v31  ;;  %v570_v38 = vadd.f32 %v569_v34, %v460_v19  ;;  %v1051_v41 = vpop.f32.mrf.mxu0 }
  0xf7   : > { %v1036_v40 = vpop.f32.mrf.mxu1 }
  0xf8   : > { %v774_v43 = vmul.f32 %v986_v32, %v750_v36  ;;  %v748_v44 = vadd.f32 %v717_v26, %v570_v38  ;;  %v581_v46 = vadd.f32 %v1036_v40, %v1024_v20  ;;  %v733_v57 = vpop.f32.mrf.mxu0 }
  0xf9   : > { %v572_v48 = vpop.f32.mrf.mxu1 }
  0xfa   : > { %vm782_vm8 = vcmp.ge.f32.partialorder %v774_v43, 0.0  ;;  %v790_v49 = vmul.f32 0.2, %v774_v43  ;;  %v772_v50 = vmul.f32 %v982_v39, %v748_v44  ;;  %v751_v51 = vadd.f32 %v1048_v29, %v581_v46  ;;  %v1052_v30 = vpop.f32.mrf.mxu0 }
  0xfb   : > { %v573_v54 = vadd.f32 %v572_v48, %v463_v22  ;;  %v1039_v56 = vpop.f32.mrf.mxu1 }
  0xfc   : > { %v798_v58 = vsel %vm782_vm8, %v774_v43, %v790_v49  ;;  %vm780_vm9 = vcmp.ge.f32.partialorder %v772_v50, 0.0  ;;  %v788_v59 = vmul.f32 0.2, %v772_v50  ;;  %v775_v60 = vmul.f32 %v987_v47, %v751_v51  ;;  %v736_v19 = vpop.f32.mrf.mxu0 }
  0xfd   : > { %806 = vst [vmem:[%s1364_s11 + $0x10] sm:$0xff] %v798_v58  ;;  %v749_v6 = vadd.f32 %v720_v33, %v573_v54  ;;  %v594_v37 = vadd.f32 %v1039_v56, %v1027_v21  ;;  %v585_v8 = vpop.f32.mrf.mxu1 }
  0xfe   : > { %v796_v61 = vsel %vm780_vm9, %v772_v50, %v788_v59  ;;  %vm783_vm10 = vcmp.ge.f32.partialorder %v775_v60, 0.0  ;;  %v791_v62 = vmul.f32 0.2, %v775_v60  ;;  %v586_v16 = vadd.f32 %v585_v8, %v476_v23 }
  0xff   : > { %804 = vst [vmem:[%s1364_s11] sm:$0xff] %v796_v61  ;;  %v773_v0 = vmul.f32 %v983_v55, %v749_v6  ;;  %v754_v2 = vadd.f32 %v1051_v41, %v594_v37  ;;  %v1040_v4 = vpop.f32.mrf.mxu1 }
 0x100   : > { %v799_v10 = vsel %vm783_vm10, %v775_v60, %v791_v62  ;;  %v752_v11 = vadd.f32 %v733_v57, %v586_v16  ;;  %v597_v5 = vadd.f32 %v1040_v4, %v1028_v24 }
 0x101   : > { %807 = vst [vmem:[%s1364_s11 + $0x18] sm:$0xff] %v799_v10  ;;  %vm781_vm11 = vcmp.ge.f32.partialorder %v773_v0, 0.0  ;;  %v789_v1 = vmul.f32 0.2, %v773_v0  ;;  %v778_v3 = vmul.f32 %v994_v25, %v754_v2  ;;  %v588_v12 = vpop.f32.mrf.mxu1 }
 0x102   : > { %v776_v13 = vmul.f32 %v990_v42, %v752_v11  ;;  %v755_v9 = vadd.f32 %v1052_v30, %v597_v5  ;;  %v589_v17 = vadd.f32 %v588_v12, %v479_v27 }
 0x103   : > { %v797_v35 = vsel %vm781_vm11, %v773_v0, %v789_v1  ;;  %vm786_vm12 = vcmp.ge.f32.partialorder %v778_v3, 0.0  ;;  %v794_v45 = vmul.f32 0.2, %v778_v3 }
 0x104   : > { %805 = vst [vmem:[%s1364_s11 + $0x8] sm:$0xff] %v797_v35  ;;  %vm784_vm13 = vcmp.ge.f32.partialorder %v776_v13, 0.0  ;;  %v792_v20 = vmul.f32 0.2, %v776_v13  ;;  %v779_v21 = vmul.f32 %v995_v7, %v755_v9  ;;  %v753_v22 = vadd.f32 %v736_v19, %v589_v17 }
 0x105   : > { %v802_v23 = vsel %vm786_vm12, %v778_v3, %v794_v45 }
 0x106   : > { %810 = vst [vmem:[%s1364_s11 + $0x30] sm:$0xff] %v802_v23  ;;  %v800_v15 = vsel %vm784_vm13, %v776_v13, %v792_v20  ;;  %vm787_vm14 = vcmp.ge.f32.partialorder %v779_v21, 0.0  ;;  %v795_v24 = vmul.f32 0.2, %v779_v21  ;;  %v777_v26 = vmul.f32 %v991_v18, %v753_v22 }
 0x107   : > { %808 = vst [vmem:[%s1364_s11 + $0x20] sm:$0xff] %v800_v15 }
 0x108   : > { %v803_v27 = vsel %vm787_vm14, %v779_v21, %v795_v24  ;;  %vm785_vm15 = vcmp.ge.f32.partialorder %v777_v26, 0.0  ;;  %v793_v28 = vmul.f32 0.2, %v777_v26 }
 0x109   : > { %811 = vst [vmem:[%s1364_s11 + $0x38] sm:$0xff] %v803_v27 }
 0x10a   : > { %v801_v29 = vsel %vm785_vm15, %v777_v26, %v793_v28 }
 0x10b   : > { %809 = vst [vmem:[%s1364_s11 + $0x28] sm:$0xff] %v801_v29 }
 0x10c PF: > { %s13_s14 = sadd.s32 1, %s1117_s14   ;;  %s1391_s12 = smov %s1113_s13 }
 0x10d   : > { %p10_p5 = scmp.ge.s32.totalorder %s13_s14, 4   ;;  %s1392_s13 = smov %s1394_s15 }
 0x10f   :  { %12 = sbr.rel (!%p10_p5) target bundleno = 2 (0x2), region = 67 }

</bundles_post_ra>
